<compile_context>
chip_gen: v5e
topology: v5e:2x2
jax: 0.10.0
libtpu: 0.0.40
codegen_flags: <defaults>
</compile_context>

<pallas_src>
import functools

import jax
import jax.numpy as jnp
from jax.experimental import pallas as pl
from jax.experimental.pallas import tpu as pltpu


def _round_up(x, m):
    return ((x + m - 1) // m) * m


def _vmem_budget_bytes():
    """~85% of this generation's physical VMEM (128 MiB v5e/v6e, 64 MiB v7x)."""
    cap = None
    try:
        info = pltpu.get_tpu_info()
        for name in ("vmem_capacity_bytes", "vmem_size_bytes", "vmem_bytes"):
            v = getattr(info, name, None)
            if v:
                cap = int(v)
                break
    except Exception:
        cap = None
    if cap is None:
        cap = 64 * 1024 * 1024  # conservative floor = v7x physical VMEM
    return int(cap * 0.85)


# --------------------------------------------------------------------------
# Kernels
# --------------------------------------------------------------------------
def _membrane_resident_kernel(x_ref, w_ref, b_ref, o_ref):
    # x: (tm, D) f32, w: (D, 2D) bf16 (VMEM-resident), b: (1, 2D) f32,
    # o: (tm, 2D) f32.  Single fused MXU dot; VPU cast of x hides under it.
    x = x_ref[...].astype(w_ref.dtype)
    o_ref[...] = (
        jnp.dot(x, w_ref[...], preferred_element_type=jnp.float32) + b_ref[...]
    )


def _membrane_tiled_kernel(x_ref, w_ref, b_ref, o_ref, acc_ref):
    # grid = (cols, rows, K); acc: (tm, tn) f32 scratch accumulator.
    k = pl.program_id(2)

    @pl.when(k == 0)
    def _():
        acc_ref[...] = jnp.zeros_like(acc_ref)

    acc_ref[...] += jnp.dot(
        x_ref[...].astype(w_ref.dtype), w_ref[...],
        preferred_element_type=jnp.float32)

    @pl.when(k == pl.num_programs(2) - 1)
    def _():
        o_ref[...] = acc_ref[...] + b_ref[...]


# --------------------------------------------------------------------------
# Parameter prep (one-time, NOT per forward pass)
# --------------------------------------------------------------------------
def prepare_params(quantum_field, weight, bias, compute_dtype=jnp.bfloat16):
    """quantum_field: (1, D); weight: (2D, D) [PyTorch layout]; bias: (2D,).

    Returns (w_eff, bias2): the field folded into the pre-transposed weight,
    kept fused as (D, 2D) real|imag, and the bias as (1, 2D) f32.

    Note: folding the field then casting to bf16 rounds slightly differently
    than the f32 reference (x*field in f32, f32 matmul); accumulation is f32.
    """
    dim = quantum_field.shape[-1]
    w_t = weight.astype(jnp.float32).T                               # (D, 2D)
    w_eff = quantum_field.reshape(dim, 1).astype(jnp.float32) * w_t  # (D, 2D)
    return (w_eff.astype(compute_dtype),
            bias.reshape(1, 2 * dim).astype(jnp.float32))


# --------------------------------------------------------------------------
# Forward wrapper
# --------------------------------------------------------------------------
def quantum_membrane_forward(x, w_eff, bias2, *, force_tiled=False,
                             tile_plan=None):
    """x: (..., D). Returns complex64 (..., D), matching the PyTorch module."""
    orig_shape = x.shape
    dim = orig_shape[-1]
    two_d = 2 * dim
    wdtype = w_eff.dtype
    wbpe = jnp.dtype(wdtype).itemsize

    x2d = x.reshape(-1, dim)                      # keep f32; cast decided below
    n = x2d.shape[0]

    budget = _vmem_budget_bytes()
    wbytes = dim * two_d * wbpe

    # ------------------------- resident-weight path -----------------------
    if n <= 8:
        tm = n
    else:
        # >= 2 row tiles so both v7x TensorCores get work even for small n.
        tm = min(512, _round_up(pl.cdiv(n, 2), 8))

    def _res_footprint(tm_):
        # Conservative: count every operand double-buffered.
        return 2 * (wbytes + tm_ * dim * 4 + two_d * 4 + tm_ * two_d * 4)

    while tm > 8 and _res_footprint(tm) > budget:
        tm = max(8, _round_up(tm // 2, 8))
    use_resident = (not force_tiled) and _res_footprint(tm) <= budget

    if use_resident:
        grid = (pl.cdiv(n, tm),)
        cp_kwargs = dict(dimension_semantics=("parallel",))
        footprint = _res_footprint(tm)
        if footprint > 12 * 1024 * 1024:
            cp_kwargs["vmem_limit_bytes"] = min(int(footprint * 5 // 4), budget)
        cost = pl.CostEstimate(
            flops=2 * n * dim * two_d,
            transcendentals=0,
            bytes_accessed=int(n * dim * 4 + wbytes + two_d * 4
                               + n * two_d * 4),
        )
        sp = pl.pallas_call(
            _membrane_resident_kernel,
            out_shape=jax.ShapeDtypeStruct((n, two_d), jnp.float32),
            grid=grid,
            in_specs=[
                pl.BlockSpec((tm, dim), lambda i: (i, 0)),
                pl.BlockSpec((dim, two_d), lambda i: (0, 0)),   # resident
                pl.BlockSpec((1, two_d), lambda i: (0, 0)),     # resident
            ],
            out_specs=pl.BlockSpec((tm, two_d), lambda i: (i, 0)),
            compiler_params=pltpu.CompilerParams(**cp_kwargs),
            cost_estimate=cost,
        )(x2d, w_eff, bias2)
    else:
        # ------------- column + K tiled path (f32 accumulator) ------------
        if tile_plan is not None:
            tm, tn, tk = tile_plan
        else:
            tm = n if n <= 8 else min(256, _round_up(pl.cdiv(n, 2), 8))
            tn = two_d if two_d <= 512 else 512
            if dim <= 1024:
                tk = dim
            elif dim % 128 == 0:
                g = dim // 128
                best = 1
                for cand in range(min(16, g), 0, -1):
                    if g % cand == 0:
                        best = cand
                        break
                tk = 128 * best
            else:
                # TODO(synk): mask/pad the K remainder for huge dims that are
                # not 128-multiples instead of falling back to full-K tiles.
                tk = dim
        if tk < dim and dim % tk != 0:
            tk = dim  # partial K tiles would pollute the accumulation

        cols = pl.cdiv(two_d, tn)
        rows = pl.cdiv(n, tm)
        ksteps = pl.cdiv(dim, tk)

        # x re-read `cols` times -> pre-cast to bf16 in the wrapper; if it is
        # streamed once, keep f32 input and cast on the VPU inside the kernel.
        if cols > 1:
            x_in = x2d.astype(wdtype)
            xbpe = wbpe
        else:
            x_in = x2d
            xbpe = 4

        footprint = (2 * (tm * tk * xbpe + tk * tn * wbpe + tn * 4
                          + tm * tn * 4) + tm * tn * 4)
        cp_kwargs = dict(
            dimension_semantics=("parallel", "parallel", "arbitrary"))
        if footprint > 12 * 1024 * 1024:
            cp_kwargs["vmem_limit_bytes"] = min(int(footprint * 5 // 4), budget)

        w_amp = rows if ksteps > 1 else 1   # weight re-stream factor
        cost = pl.CostEstimate(
            flops=2 * n * dim * two_d,
            transcendentals=0,
            bytes_accessed=int(cols * n * dim * xbpe + w_amp * wbytes
                               + two_d * 4 + n * two_d * 4),
        )
        sp = pl.pallas_call(
            _membrane_tiled_kernel,
            out_shape=jax.ShapeDtypeStruct((n, two_d), jnp.float32),
            grid=(cols, rows, ksteps),
            in_specs=[
                pl.BlockSpec((tm, tk), lambda j, i, k: (i, k)),
                pl.BlockSpec((tk, tn), lambda j, i, k: (k, j)),
                pl.BlockSpec((1, tn), lambda j, i, k: (0, j)),
            ],
            out_specs=pl.BlockSpec((tm, tn), lambda j, i, k: (i, j)),
            scratch_shapes=[pltpu.VMEM((tm, tn), jnp.float32)],
            compiler_params=pltpu.CompilerParams(**cp_kwargs),
            cost_estimate=cost,
        )(x_in, w_eff, bias2)

    real = sp[:, :dim].reshape(orig_shape)
    imag = sp[:, dim:].reshape(orig_shape)
    # TODO(synk): memory-bound consumers should take the split f32 planes (or
    # an in-kernel interleaved complex64-layout slab) to skip this extra pass.
    return jax.lax.complex(real, imag)


# --------------------------------------------------------------------------
# Init + reference + demo
# --------------------------------------------------------------------------
def init_params(key, dim):
    """Deterministic init mirroring the PyTorch module's __init__."""
    k_field, k_w, k_b = jax.random.split(key, 3)
    quantum_field = jax.random.normal(k_field, (1, dim), jnp.float32) * 0.02
    bound = 1.0 / jnp.sqrt(jnp.float32(dim))
    weight = jax.random.uniform(k_w, (2 * dim, dim), jnp.float32, -bound, bound)
    bias = jax.random.uniform(k_b, (2 * dim,), jnp.float32, -bound, bound)
    return quantum_field, weight, bias


def _reference(x, quantum_field, weight, bias):
    fi = x * quantum_field
    sp = fi @ weight.T + bias
    dim = x.shape[-1]
    return jax.lax.complex(sp[..., :dim], sp[..., dim:])


if __name__ == "__main__":
    key = jax.random.PRNGKey(0)
    k_params, k_x, k_x2 = jax.random.split(key, 3)

    # --- main demo: small module-consistent shapes (resident-weight path) ---
    dim = 32
    batch, seq = 2, 8
    quantum_field, weight, bias = init_params(k_params, dim)
    x = jax.random.normal(k_x, (batch, seq, dim), jnp.float32)
    w_eff, bias2 = prepare_params(quantum_field, weight, bias)

    fwd = jax.jit(quantum_membrane_forward)
    out = fwd(x, w_eff, bias2)
    jax.block_until_ready(out)

    ref = _reference(x, quantum_field, weight, bias)
    assert out.shape == (batch, seq, dim) and out.dtype == jnp.complex64
    assert jnp.allclose(out.real, ref.real, atol=1e-2, rtol=1e-2)
    assert jnp.allclose(out.imag, ref.imag, atol=1e-2, rtol=1e-2)

    # --- also exercise the column + K-tiled accumulator path ----------------
    dim2 = 256
    qf2, w2, b2 = init_params(jax.random.PRNGKey(1), dim2)
    x2 = jax.random.normal(k_x2, (4, 32, dim2), jnp.float32)
    w_eff2, bias2_2 = prepare_params(qf2, w2, b2)
    fwd_tiled = jax.jit(functools.partial(
        quantum_membrane_forward, force_tiled=True, tile_plan=(64, 128, 128)))
    out2 = fwd_tiled(x2, w_eff2, bias2_2)
    jax.block_until_ready(out2)
    ref2 = _reference(x2, qf2, w2, b2)
    assert out2.shape == (4, 32, dim2) and out2.dtype == jnp.complex64
    assert jnp.allclose(out2.real, ref2.real, atol=2e-2, rtol=2e-2)
    assert jnp.allclose(out2.imag, ref2.imag, atol=2e-2, rtol=2e-2)

    print("KERNEL_OK")
</pallas_src>

<mosaic_0001>
module attributes {stable_mosaic.version = 11 : i64} {
  func.func @_membrane_resident_kernel(%arg0: i32, %arg1: memref<8x32xf32, #tpu.memory_space<vmem>>, %arg2: memref<32x64xbf16, #tpu.memory_space<vmem>>, %arg3: memref<1x64xf32, #tpu.memory_space<vmem>>, %arg4: memref<8x64xf32, #tpu.memory_space<vmem>>) attributes {dimension_semantics = [#tpu.dimension_semantics<parallel>], iteration_bounds = array<i64: 2>, scalar_prefetch = 0 : i64, scratch_operands = 0 : i64, tpu.core_type = #tpu.core_type<tc>, window_params = [{transform_indices = @transform_0, window_bounds = array<i64: 8, 32>}, {pipeline_mode = #tpu.pipeline_mode<synchronous>, transform_indices = @transform_1, window_bounds = array<i64: 32, 64>}, {pipeline_mode = #tpu.pipeline_mode<synchronous>, transform_indices = @transform_2, window_bounds = array<i64: 1, 64>}, {transform_indices = @transform_3, window_bounds = array<i64: 8, 64>}]} {
    %c0 = arith.constant 0 : index
    %c0_0 = arith.constant 0 : index
    %0 = vector.load %arg1[%c0, %c0_0] : memref<8x32xf32, #tpu.memory_space<vmem>>, vector<8x32xf32>
    %1 = arith.truncf %0 : vector<8x32xf32> to vector<8x32xbf16>
    %c0_1 = arith.constant 0 : index
    %c0_2 = arith.constant 0 : index
    %2 = vector.load %arg2[%c0_1, %c0_2] : memref<32x64xbf16, #tpu.memory_space<vmem>>, vector<32x64xbf16>
    %cst = arith.constant dense<0.000000e+00> : vector<8x64xf32>
    %3 = tpu.matmul %1, %2, %cst {dimension_numbers = #tpu.dot_dimension_numbers<[1], [0], [0], [1], [0, 0, 1, 1], [], []>} : vector<8x32xbf16>, vector<32x64xbf16>, vector<8x64xf32> -> vector<8x64xf32>
    %c0_3 = arith.constant 0 : index
    %c0_4 = arith.constant 0 : index
    %4 = vector.load %arg3[%c0_3, %c0_4] : memref<1x64xf32, #tpu.memory_space<vmem>>, vector<1x64xf32>
    %5 = vector.broadcast %4 : vector<1x64xf32> to vector<8x64xf32>
    %6 = arith.addf %3, %5 : vector<8x64xf32>
    %c0_5 = arith.constant 0 : index
    %c0_6 = arith.constant 0 : index
    %7 = vector.load %arg4[%c0_5, %c0_6] : memref<8x64xf32, #tpu.memory_space<vmem>>, vector<8x64xf32>
    tpu.vector_store %arg4[%c0_5, %c0_6], %6 {strides = array<i32>} : memref<8x64xf32, #tpu.memory_space<vmem>>, vector<8x64xf32>,
    return
  }
  func.func @transform_0(%arg0: i32) -> (i32, i32) {
    %c0_i32 = arith.constant 0 : i32
    %c0_i32_0 = arith.constant 0 : i32
    return %arg0, %c0_i32 : i32, i32
  }
  func.func @transform_1(%arg0: i32) -> (i32, i32) {
    %c0_i32 = arith.constant 0 : i32
    %c0_i32_0 = arith.constant 0 : i32
    %c0_i32_1 = arith.constant 0 : i32
    return %c0_i32, %c0_i32_0 : i32, i32
  }
  func.func @transform_2(%arg0: i32) -> (i32, i32) {
    %c0_i32 = arith.constant 0 : i32
    %c0_i32_0 = arith.constant 0 : i32
    %c0_i32_1 = arith.constant 0 : i32
    return %c0_i32, %c0_i32_0 : i32, i32
  }
  func.func @transform_3(%arg0: i32) -> (i32, i32) {
    %c0_i32 = arith.constant 0 : i32
    %c0_i32_0 = arith.constant 0 : i32
    return %arg0, %c0_i32 : i32, i32
  }
}

</mosaic_0001>

<bundles_post_ra>
// kernel: custom-call
= control target key start
LH: loop header
LB: loop body
LE: loop exit
PB: predicated region body
PF: predicated region fallthrough
CT: control target
= control target key end

     0   :  { %s105_s0 = inlined_call_operand.vmem [shape: f32[2,8,32], index: 0, kind: input, shape index: {}]   ;;  %s106_s1 = inlined_call_operand.vmem [shape: f32[2,8,32], index: 1, kind: input, shape index: {}]   ;;  %s107_s2 = inlined_call_operand.hbm [shape: c64[2,8,32], index: 2, kind: output, shape index: {}]  }
   0x1   :  { %s3_s11 = scalar_lea.hbm %s107_s2, 16 }
   0x2   :  { %4 = vsyncpa [#allocation0], 0  ;;  %s6_s14 = sshll.u32 %s105_s0, 4  ;;  %s8_s17 = sshll.u32 %s107_s2, 4  ;;  %s7_s14 = int_to_ptr.vmem [resolvable:$true] %s6_s14  ;;  %s9_s17 = int_to_ptr.hbm [resolvable:$true] %s8_s17 }
   0x3   :  { %11 = dma.vmem_to_hbm [thread:$0]  %s7_s14, 256, %s9_s17, [#allocation0] }
   0x4   :  { %74 = dma.done.wait [#allocation0], 256  }
   0x5   :  { %75 = vsyncadd [#allocation0], 4294967040 }
   0x6   :  { %14 = vsyncpa [#allocation0], 1 }
   0x7   :  { %15 = vsyncpa [#allocation1], 0  ;;  %s17_s20 = sshll.u32 %s106_s1, 4  ;;  %s19_s21 = sshll.u32 %s3_s11, 4  ;;  %s18_s20 = int_to_ptr.vmem [resolvable:$true] %s17_s20  ;;  %s20_s21 = int_to_ptr.hbm [resolvable:$true] %s19_s21 }
   0x8   :  { %22 = dma.vmem_to_hbm [thread:$0]  %s18_s20, 256, %s20_s21, [#allocation1] }
   0x9   :  { %76 = dma.done.wait [#allocation1], 256  }
   0xa   :  { %77 = vsyncadd [#allocation1], 4294967040 }
   0xb   :  { %25 = vsyncpa [#allocation1], 1 }

// kernel: quantum_membrane_forward.1
= control target key start
LH: loop header
LB: loop body
LE: loop exit
PB: predicated region body
PF: predicated region fallthrough
CT: control target
= control target key end

     0   :  { %8 = vsyncpa [#allocation3], 0  ;;  %s627_s0 = inlined_call_operand.hbm [shape: f32[16,32], index: 0, kind: input, shape index: {}]   ;;  %s628_s1 = inlined_call_operand.hbm [shape: bf16[32,64], index: 1, kind: input, shape index: {}]   ;;  %s629_s2 = inlined_call_operand.vmem [shape: f32[1,64], index: 2, kind: input, shape index: {}]   ;;  %s630_s3 = inlined_call_operand.vmem [shape: f32[16,64], index: 3, kind: output, shape index: {}]  }
   0x1   :  { %10 = vsyncpa [#allocation3 + $0x1], 0 }
   0x2   :  { %11 = vsyncpa [#allocation5], 0  ;;  %s521_s12 = smov 0   ;;  %s523_s13 = smov 0  }
   0x3   :  { %s525_s14 = smov 0   ;;  %s527_s15 = smov 0  }
   0x4 LB: > { %s127_s18 = sshll.u32 %s628_s1, 4  ;;  %s543_s19 = sadd.s32 4294967295, %s496_s15   ;;  %s496_s15 = sphi %s527_s15, %s637_s15   ;;  %s492_s14 = sphi %s525_s14, %s636_s14   ;;  %s488_s13 = sphi %s523_s13, %s635_s13   ;;  %s484_s12 = sphi %s521_s12, %s634_s12   ;;  %s128_s18 = int_to_ptr.hbm [resolvable:$true] %s127_s18 }
   0x5   : > { %p323_p0 = scmp.ge.s32.totalorder %s496_s15, 1  ;;  %p38_p1 = scmp.eq.s32.totalorder %s543_s19, 0 }
   0x6   : > { %p116_p2 = scmp.lt.s32.totalorder %s496_s15, 3  ;;  %s498_s21 = smov [#allocation4]  }
   0x7   : > { %s129_s22 = sshll.u32 %s498_s21, 4  ;;  %s499_s23 = smov 64   ;;  %s130_s22 = int_to_ptr.vmem [resolvable:$true] %s129_s22 }
   0x8   : > { %p548_p3 = pnand %p323_p0, %p116_p2  ;;  %s500_s24 = smov 4  }
   0x9   : > { %s557_s25 = sadd.s32 1, %s496_s15   ;;  %s24_s27 = sadd.s32 1, %s492_s14 }
   0xa   : > { %p351_p4 = pneg %p548_p3  ;;  %s21_s26 = ssub.s32 %s496_s15, %s557_s25 }
   0xb   : > { %p22_p6 = scmp.eq.s32.totalorder %s21_s26, 0  ;;  %p31_p7 = scmp.ne.s32.totalorder %s492_s14, %s488_s13 }
   0xc   : > { %p352_p5 = pnand %p351_p4, %p38_p1  ;;  %p32_p8 = scmp.eq.s32.totalorder %s496_s15, 0 }
   0xd   : > { %p37_p9 = scmp.ne.s32.totalorder %s488_s13, %s484_s12  ;;  %p360_p12 = scmp.lt.s32.totalorder %s496_s15, 2 }
   0xe   : > { %354 = dma.hbm_to_vmem [thread:$0]  (!%p352_p5), %s128_s18, 256, %s130_s22, [#allocation5], %s499_s23, %s499_s23, %s500_s24  }
   0xf   : > { %s567_s28 = scalar_select %p22_p6, %s492_s14, %s24_s27  }
  0x10   : > { %p33_p10 = por %p32_p8, %p31_p7  ;;  %p571_p11 = por %p38_p1, %p37_p9 }
  0x11   : > { %s146_s30 = sand.u32 1, %s492_s14   ;;  %s327_s5 = sshll.u32 %s496_s15, 3 }
  0x12   : > { %s326_s4 = sshll.u32 %s146_s30, 3  ;;  %s154_s8 = scalar_lea.hbm %s627_s0, %s327_s5 }
  0x13   : > { %s150_s9 = scalar_lea.vmem [#allocation2], %s326_s4  ;;  %s156_s11 = sshll.u32 %s154_s8, 4  ;;  %s157_s11 = int_to_ptr.hbm [resolvable:$true] %s156_s11 }
  0x14   : > { %s158_s10 = sshll.u32 %s150_s9, 4  ;;  %p581_p13 = pnand %p360_p12, %p33_p10  ;;  %s159_s10 = int_to_ptr.vmem [resolvable:$true] %s158_s10 }
  0x15   : > { %s147_s16 = scalar_lea.sflag [#allocation3], %s146_s30  ;;  %s428_s17 = sshra.s32 %s157_s11, 4  ;;  %s429_s17 = int_to_ptr.hbm [resolvable:$true] %s428_s17 }
  0x16   : > { %s430_s18 = scalar_lea.hbm %s429_s17, 8  ;;  %p432_p2 = pneg %p581_p13 }
  0x17   : > { %p431_p0 = scmp.ne.s32.totalorder %s429_s17, %s430_s18  ;;  %s435_s22 = scalar_lea.hbm %s627_s0, 16 }
  0x18   : > { %p436_p6 = scmp.lt.s32.totalorder %s429_s17, %s627_s0  ;;  %p437_p7 = scmp.lt.s32.totalorder %s435_s22, %s430_s18 }
  0x19   : > { %p433_p4 = pnand %p432_p2, %p431_p0 }
  0x1a   : > { %p438_p8 = por %p437_p7, %p436_p6 }
  0x1b   : > { %p434_p5 = pneg %p433_p4 }
  0x1d   : > { %p439_p9 = pnand %p438_p8, %p434_p5 }
  0x1f   : > { %442 = shalt.err (!%p439_p9)
}
  0x20   : > { %358 = dma.hbm_to_vmem [thread:$0]  (!%p581_p13), %s157_s11, 128, %s159_s10, %s147_s16  }
  0x21   : > { %167 = sbr.rel (%p548_p3) target bundleno = 183 (0xb7), region = 32  ;;  %s169_s26 = sand.u32 (!%p548_p3), 1, %s488_s13  }
  0x22   : > { %s329_s27 = sshll.u32 (!%p548_p3), %s169_s26, 3  ;;  %s170_s30 = scalar_lea.sflag (!%p548_p3), [#allocation3], %s169_s26 }
  0x23   : > { %s173_s4 = scalar_lea.vmem (!%p548_p3), [#allocation2], %s329_s27 }
  0x26   : > { %475 = dma.done.wait (%p571_p11), %s170_s30, 128  }
  0x27   : > { %477 = vsyncadd (%p571_p11), %s170_s30, 4294967168 }
  0x28   : > { %479 = dma.done.wait (%p38_p1), [#allocation5], 256  }
  0x29   : > { %481 = vsyncadd (%p38_p1), [#allocation5], 4294967040  ;;  %v344_v0 = vld [vmem:[#allocation4 + $0x8] sm:$0xff]  ;;  %v343_v1 = vld [vmem:[#allocation4] sm:$0xff]  ;;  %vm228_vm0 = vcmask 261120   ;;  %p201_p3 = scmp.lt.s32.totalorder %s543_s19, 1 }
  0x2a   : > { %238 = vmatpush.bf16.msra.mxu0 %v344_v0  ;;  %v206_v2 = vld [vmem:[%s173_s4] sm:$0xff]  ;;  %vm245_vm1 = vcmask 523264  }
  0x2b   : > { %v207_v3 = vpack.c.bf16 %v206_v2, %v206_v2  ;;  %s639_s19 = smov (!%p201_p3, %s543_s19), 1  ;;  %v397_v4 = vld [vmem:[%s629_s2] ss:$0 sm:$0xff] }
  0x2c   : > { %s331_s20 = sshll.u32 %s639_s19, 3 }
  0x2d   : > { %s204_s8 = scalar_lea.vmem %s630_s3, %s331_s20 }
  0x2e   : > { %239 = vmatpush.bf16.msra.mxu0 %v343_v1 }
  0x31   : > { %340 = vmatmul.msk.bf16.vlgmr.msra.gmra.mxu0 %vm228_vm0, %v207_v3 }
  0xae   : > { %v241_v5 = vpop.f32.mrf.mxu0 }
  0xaf   : > { %v242_v6 = vadd.f32 %v397_v4, %v241_v5 }
  0xb1   : > { %246 = vst.msk [vmem:[%s204_s8] sm:$0xff] %vm245_vm1, %v242_v6 }
  0xb6   : > { %v243_v7 = vpop.f32.mrf.mxu0 }
  0xb7 PF: > { %p14_p1 = scmp.ge.s32.totalorder %s557_s25, 4   ;;  %s634_s12 = smov %s488_s13 }
  0xb8   : > { %s635_s13 = smov %s492_s14  ;;  %s636_s14 = smov %s567_s28 }
  0xb9   : > { %s637_s15 = smov %s557_s25  ;;  %16 = sbr.rel (!%p14_p1) target bundleno = 4 (0x4), region = 76 }
  0xbe   :  { %266 = vsyncpa [#allocation3], 1 }
  0xbf   :  { %268 = vsyncpa [#allocation3 + $0x1], 1 }
  0xc0   :  { %269 = vsyncpa [#allocation5], 1 }

</bundles_post_ra>
